<compile_context>
chip_gen: v5e
topology: v5e:2x2
jax: 0.10.0
libtpu: 0.0.40
codegen_flags: <defaults>
</compile_context>

<pallas_src>
import jax
import jax.numpy as jnp
import numpy as np
from jax.experimental import pallas as pl
from jax.experimental.pallas import tpu as pltpu


def _gaussian_kernel(gamma_ref, x_ref, wtm2_ref, wsq_ref, b_ref, o_ref):
    """One (batch-block, L-tile) grid step.

    gamma_ref : (1, 1)      f32        SMEM scalar
    x_ref     : (nb, K, tl) f32/bf16   native unfold layout, L on lanes
    wtm2_ref  : (O, K)      f32/bf16   resident -2 * W^T (factor folded in)
    wsq_ref   : (O, 1)      f32        precomputed ||w_o||^2 (hoisted)
    b_ref     : (O, 1)      f32        bias column (zeros when b is None)
    o_ref     : (nb, O, tl) f32        lane-dense output tiles
    """
    gamma = gamma_ref[0, 0]
    wtm2 = wtm2_ref[...]
    wsq = wsq_ref[...]
    bias = b_ref[...]
    nb = x_ref.shape[0]
    for i in range(nb):                                   # small static unroll
        x = x_ref[i]                                      # (K, tl)
        # K-contraction on the MXU: (O, tl) = (-2 W^T) @ X  (f32 accumulate).
        xw_m2 = jnp.dot(wtm2, x.astype(wtm2.dtype),
                        preferred_element_type=jnp.float32)
        # ||x_l||^2 per sliding position (sublane reduce over K); f32 always.
        xf = x.astype(jnp.float32)
        xsq = jnp.sum(xf * xf, axis=0, keepdims=True)     # (1, tl)
        # ||x - w||^2, clamped >= 0 against cancellation.
        # TODO(synk): if gamma is known non-negative, fold gamma into wtm2/wsq
        # and use min(., 0) to drop the remaining (O, tl) multiply.
        l = jnp.maximum(xsq + xw_m2 + wsq, 0.0)           # (O, tl)
        o_ref[i] = (jnp.exp(-gamma * l) + bias).astype(o_ref.dtype)


def gaussian_kernel_forward(x_unf, w, b, gamma, *, max_tl=1024, nb=1,
                            use_bf16_mxu=False, out_layout="blo",
                            vmem_tile_budget=24 << 20):
    """x_unf: (B, K, L), w: (O, C, kh, kw), b: (O,) or None, gamma: scalar.

    out_layout: "blo" -> (B, L, O) like the torch module; "bol" -> (B, O, L)
                (skips the final transpose pass for consumers that accept it).
    nb        : batch rows blocked per grid step (use >1 when B is large and
                L/tl is small, to amortize per-step overhead).
    """
    B, K, L = x_unf.shape
    O = w.shape[0]
    assert w.size == K * O, "w must have C*kh*kw == K"

    # Exact PyTorch reshape semantics: w.view(1,1,-1,O) -> w_mat[k, o] = flat[k*O + o]
    w_mat = w.reshape(-1).reshape(K, O).astype(jnp.float32)
    dot_dtype = (jnp.bfloat16 if (use_bf16_mxu or x_unf.dtype == jnp.bfloat16)
                 else jnp.float32)
    wt_m2 = (-2.0 * jnp.transpose(w_mat)).astype(dot_dtype)        # (O, K)
    wsq = jnp.sum(w_mat * w_mat, axis=0)[:, None]                  # (O, 1) f32
    if b is None:
        # TODO(synk): torch skips the add entirely when b is None; +0 is equivalent.
        b_col = jnp.zeros((O, 1), jnp.float32)
    else:
        b_col = jnp.reshape(b, (O, 1)).astype(jnp.float32)
    gamma_arr = jnp.full((1, 1), gamma, jnp.float32)

    x = x_unf                       # native layout + dtype: no extra HBM pass
    x_item = x.dtype.itemsize

    nb = max(1, min(int(nb), B))

    # Lane tile: largest 128-multiple covering L, capped by max_tl and VMEM budget.
    L128 = ((L + 127) // 128) * 128
    tl = min(max_tl, L128)
    bytes_per_lane = 2 * nb * (K * x_item + O * 4)       # double-buffered x + out
    resident = O * K * jnp.dtype(dot_dtype).itemsize + 2 * O * 4 + 64
    max_lanes = max(128, (vmem_tile_budget - resident) // max(bytes_per_lane, 1))
    tl = max(128, min(tl, (max_lanes // 128) * 128))
    n_l = pl.cdiv(L, tl)            # tail tile handled by Pallas masking (no x pad)
    n_b = pl.cdiv(B, nb)

    est = bytes_per_lane * tl + resident
    vmem_limit = int(min(48 << 20, max(32 << 20, 3 * est)))   # safe on v5e/v6e/v7x

    out = pl.pallas_call(
        _gaussian_kernel,
        out_shape=jax.ShapeDtypeStruct((B, O, L), jnp.float32),
        grid=(n_b, n_l),
        in_specs=[
            pl.BlockSpec(memory_space=pltpu.MemorySpace.SMEM),        # gamma scalar
            pl.BlockSpec((nb, K, tl), lambda bi, j: (bi, 0, j)),      # x tile
            pl.BlockSpec((O, K), lambda bi, j: (0, 0)),               # -2 W^T (resident)
            pl.BlockSpec((O, 1), lambda bi, j: (0, 0)),               # ||w||^2
            pl.BlockSpec((O, 1), lambda bi, j: (0, 0)),               # bias
        ],
        out_specs=pl.BlockSpec((nb, O, tl), lambda bi, j: (bi, 0, j)),
        compiler_params=pltpu.CompilerParams(
            dimension_semantics=("parallel", "parallel"),
            vmem_limit_bytes=vmem_limit),
    )(gamma_arr, x, wt_m2, wsq, b_col)

    if out_layout == "bol":
        return out
    # Torch layout (B, L, O). Cheap for small O (K/O-times fewer bytes than x);
    # dropped entirely with out_layout="bol".
    return jnp.transpose(out, (0, 2, 1))


def _reference_forward(x_unf, w, b, gamma):
    """Pure-JAX transcription of the PyTorch forward (for correctness check)."""
    B, K, L = x_unf.shape
    O = w.shape[0]
    xt = jnp.transpose(x_unf, (0, 2, 1))[:, :, :, None]        # (B, L, K, 1)
    wv = w.reshape(-1).reshape(1, 1, K, O)                      # (1, 1, K, O)
    l = jnp.sum((xt - wv) ** 2, axis=2)                         # (B, L, O)
    t = jnp.exp(-gamma * l)
    if b is not None:
        t = t + b
    return t


if __name__ == "__main__":
    key = jax.random.PRNGKey(0)
    B, C, Hs, Ws = 2, 4, 16, 16
    kh = kw = 3
    O = 8
    K = C * kh * kw                       # 36
    L = (Hs - kh + 1) * (Ws - kw + 1)     # 196 sliding positions (stride 1, no pad)

    k1, k2, k3 = jax.random.split(key, 3)
    # Synthetic unfolded input (what F.unfold(x_nchw, 3) would produce shape-wise).
    x_unf = jax.random.normal(k1, (B, K, L), jnp.float32)
    # Synthetic conv-style parameters (shapes from a conv weight (O, C, kh, kw)).
    w = 0.1 * jax.random.normal(k2, (O, C, kh, kw), jnp.float32)
    b = 0.1 * jax.random.normal(k3, (O,), jnp.float32)
    gamma = 0.5  # nn.Parameter scalar in the torch module

    ref = _reference_forward(x_unf, w, b, gamma)

    # 1) Full-f32 path.
    out = jax.block_until_ready(gaussian_kernel_forward(x_unf, w, b, gamma))
    assert out.shape == (B, L, O), out.shape
    np.testing.assert_allclose(np.asarray(out), np.asarray(ref), rtol=1e-4, atol=1e-4)

    # 2) bf16-MXU path (v6e/v7x byte/flop saver); exp/add math stays f32.
    out_bf = jax.block_until_ready(
        gaussian_kernel_forward(x_unf, w, b, gamma, use_bf16_mxu=True))
    np.testing.assert_allclose(np.asarray(out_bf), np.asarray(ref), rtol=2e-2, atol=2e-3)

    # 3) b=None + batch-blocked (nb=2) + transpose-free (B, O, L) output.
    out_bol = jax.block_until_ready(
        gaussian_kernel_forward(x_unf, w, None, gamma, nb=2, out_layout="bol"))
    ref_bol = jnp.transpose(_reference_forward(x_unf, w, None, gamma), (0, 2, 1))
    np.testing.assert_allclose(np.asarray(out_bol), np.asarray(ref_bol),
                               rtol=1e-4, atol=1e-4)

    print("KERNEL_OK")
</pallas_src>

<mosaic_0001>
module attributes {stable_mosaic.version = 11 : i64} {
  func.func @_gaussian_kernel(%arg0: i32, %arg1: i32, %arg2: memref<1x1xf32, #tpu.memory_space<smem>>, %arg3: memref<1x36x256xf32, #tpu.memory_space<vmem>>, %arg4: memref<8x36xf32, #tpu.memory_space<vmem>>, %arg5: memref<8x1xf32, #tpu.memory_space<vmem>>, %arg6: memref<8x1xf32, #tpu.memory_space<vmem>>, %arg7: memref<1x8x256xf32, #tpu.memory_space<vmem>>) attributes {dimension_semantics = [#tpu.dimension_semantics<parallel>, #tpu.dimension_semantics<parallel>], iteration_bounds = array<i64: 2, 1>, scalar_prefetch = 0 : i64, scratch_operands = 0 : i64, tpu.core_type = #tpu.core_type<tc>, window_params = [{transform_indices = @transform_0, window_bounds = array<i64: 1, 1>}, {transform_indices = @transform_1, window_bounds = array<i64: 1, 36, 256>}, {pipeline_mode = #tpu.pipeline_mode<synchronous>, transform_indices = @transform_2, window_bounds = array<i64: 8, 36>}, {pipeline_mode = #tpu.pipeline_mode<synchronous>, transform_indices = @transform_3, window_bounds = array<i64: 8, 1>}, {pipeline_mode = #tpu.pipeline_mode<synchronous>, transform_indices = @transform_4, window_bounds = array<i64: 8, 1>}, {transform_indices = @transform_5, window_bounds = array<i64: 1, 8, 256>}]} {
    %c0 = arith.constant 0 : index
    %c0_0 = arith.constant 0 : index
    %0 = memref.load %arg2[%c0, %c0_0] : memref<1x1xf32, #tpu.memory_space<smem>>
    %c0_1 = arith.constant 0 : index
    %c0_2 = arith.constant 0 : index
    %1 = vector.load %arg4[%c0_1, %c0_2] : memref<8x36xf32, #tpu.memory_space<vmem>>, vector<8x36xf32>
    %c0_3 = arith.constant 0 : index
    %c0_4 = arith.constant 0 : index
    %2 = vector.load %arg5[%c0_3, %c0_4] : memref<8x1xf32, #tpu.memory_space<vmem>>, vector<8x1xf32>
    %c0_5 = arith.constant 0 : index
    %c0_6 = arith.constant 0 : index
    %3 = vector.load %arg6[%c0_5, %c0_6] : memref<8x1xf32, #tpu.memory_space<vmem>>, vector<8x1xf32>
    %c0_7 = arith.constant 0 : index
    %c0_8 = arith.constant 0 : index
    %c0_9 = arith.constant 0 : index
    %4 = vector.load %arg3[%c0_7, %c0_8, %c0_9] : memref<1x36x256xf32, #tpu.memory_space<vmem>>, vector<1x36x256xf32>
    %5 = vector.shape_cast %4 : vector<1x36x256xf32> to vector<36x256xf32>
    %cst = arith.constant dense<0.000000e+00> : vector<8x256xf32>
    %6 = tpu.matmul %1, %5, %cst {dimension_numbers = #tpu.dot_dimension_numbers<[1], [0], [0], [1], [0, 0, 1, 1], [], []>} : vector<8x36xf32>, vector<36x256xf32>, vector<8x256xf32> -> vector<8x256xf32>
    %7 = arith.mulf %5, %5 : vector<36x256xf32>
    %cst_10 = arith.constant dense<0.000000e+00> : vector<256xf32>
    %8 = vector.multi_reduction <add>, %7, %cst_10 [0] : vector<36x256xf32> to vector<256xf32>
    %9 = vector.shape_cast %8 : vector<256xf32> to vector<1x256xf32>
    %10 = vector.broadcast %9 : vector<1x256xf32> to vector<8x256xf32>
    %11 = arith.addf %10, %6 : vector<8x256xf32>
    %12 = vector.broadcast %2 : vector<8x1xf32> to vector<8x256xf32>
    %13 = arith.addf %11, %12 : vector<8x256xf32>
    %cst_11 = arith.constant 0.000000e+00 : f32
    %14 = vector.broadcast %cst_11 : f32 to vector<8x256xf32>
    %15 = arith.maximumf %13, %14 : vector<8x256xf32>
    %cst_12 = arith.constant 0.000000e+00 : f32
    %16 = arith.subf %cst_12, %0 : f32
    %17 = vector.broadcast %16 : f32 to vector<8x256xf32>
    %18 = arith.mulf %17, %15 : vector<8x256xf32>
    %19 = math.exp %18 : vector<8x256xf32>
    %20 = vector.broadcast %3 : vector<8x1xf32> to vector<8x256xf32>
    %21 = arith.addf %19, %20 : vector<8x256xf32>
    %c0_13 = arith.constant 0 : index
    %c0_14 = arith.constant 0 : index
    %c0_15 = arith.constant 0 : index
    %22 = vector.load %arg7[%c0_13, %c0_14, %c0_15] : memref<1x8x256xf32, #tpu.memory_space<vmem>>, vector<1x8x256xf32>
    %23 = vector.shape_cast %22 : vector<1x8x256xf32> to vector<8x256xf32>
    %24 = vector.shape_cast %21 : vector<8x256xf32> to vector<1x8x256xf32>
    tpu.vector_store %arg7[%c0_13, %c0_14, %c0_15], %24 {strides = array<i32>} : memref<1x8x256xf32, #tpu.memory_space<vmem>>, vector<1x8x256xf32>,
    return
  }
  func.func @transform_0(%arg0: i32, %arg1: i32) -> (i32, i32) {
    %c0_i32 = arith.constant 0 : i32
    %c0_i32_0 = arith.constant 0 : i32
    %c0_i32_1 = arith.constant 0 : i32
    return %c0_i32, %c0_i32_0 : i32, i32
  }
  func.func @transform_1(%arg0: i32, %arg1: i32) -> (i32, i32, i32) {
    %c0_i32 = arith.constant 0 : i32
    %c0_i32_0 = arith.constant 0 : i32
    return %arg0, %c0_i32, %arg1 : i32, i32, i32
  }
  func.func @transform_2(%arg0: i32, %arg1: i32) -> (i32, i32) {
    %c0_i32 = arith.constant 0 : i32
    %c0_i32_0 = arith.constant 0 : i32
    %c0_i32_1 = arith.constant 0 : i32
    return %c0_i32, %c0_i32_0 : i32, i32
  }
  func.func @transform_3(%arg0: i32, %arg1: i32) -> (i32, i32) {
    %c0_i32 = arith.constant 0 : i32
    %c0_i32_0 = arith.constant 0 : i32
    %c0_i32_1 = arith.constant 0 : i32
    return %c0_i32, %c0_i32_0 : i32, i32
  }
  func.func @transform_4(%arg0: i32, %arg1: i32) -> (i32, i32) {
    %c0_i32 = arith.constant 0 : i32
    %c0_i32_0 = arith.constant 0 : i32
    %c0_i32_1 = arith.constant 0 : i32
    return %c0_i32, %c0_i32_0 : i32, i32
  }
  func.func @transform_5(%arg0: i32, %arg1: i32) -> (i32, i32, i32) {
    %c0_i32 = arith.constant 0 : i32
    %c0_i32_0 = arith.constant 0 : i32
    return %arg0, %c0_i32, %arg1 : i32, i32, i32
  }
}

</mosaic_0001>

<bundles_post_ra>
// kernel: tpu_custom_call.1
= control target key start
LH: loop header
LB: loop body
LE: loop exit
PB: predicated region body
PF: predicated region fallthrough
CT: control target
= control target key end

     0   :  { %s778_s0 = inlined_call_operand.<no memory space> [shape: f32[1,1], index: 0, kind: input, shape index: {}]   ;;  %s779_s1 = inlined_call_operand.vmem [shape: f32[2,36,196], index: 1, kind: input, shape index: {}]   ;;  %s780_s2 = inlined_call_operand.vmem [shape: f32[8,36], index: 2, kind: input, shape index: {}]   ;;  %s781_s3 = inlined_call_operand.vmem [shape: f32[8,1], index: 3, kind: input, shape index: {}]   ;;  %s782_s4 = inlined_call_operand.vmem [shape: f32[8,1], index: 4, kind: input, shape index: {}]   ;;  %s783_s5 = inlined_call_operand.hbm [shape: f32[2,8,196], index: 5, kind: output, shape index: {}]  }
   0x1   :  { %10 = sst [smem:[#allocation2]] %s778_s0 }
   0x2   :  { %11 = vsyncpa [#allocation4], 0 }
   0x3   :  { %13 = vsyncpa [#allocation4 + $0x1], 0  ;;  %s668_s20 = smov 0   ;;  %s670_s21 = smov 0  }
   0x4   :  { %s672_s22 = smov 0   ;;  %s674_s23 = smov 0  }
   0x5   :  { %s676_s24 = smov 0   ;;  %s678_s25 = smov 0  }
   0x6 LB: > { %s475_s0 = sadd.s32 4294967295, %s632_s25   ;;  %s476_s26 = sadd.s32 4294967294, %s632_s25   ;;  %s632_s25 = sphi %s678_s25, %s19_s25   ;;  %s628_s24 = sphi %s676_s24, %s790_s24   ;;  %s624_s23 = sphi %s674_s23, %s789_s23   ;;  %s620_s22 = sphi %s672_s22, %s788_s22   ;;  %s616_s21 = sphi %s670_s21, %s787_s21   ;;  %s612_s20 = sphi %s668_s20, %s786_s20  }
   0x7   : > { %s31_s27 = sadd.s32 1, %s628_s24  ;;  %s152_s28 = sadd.s32 1, %s620_s22 }
   0x8   : > { %p33_p0 = scmp.ge.s32.totalorder %s31_s27, 2  ;;  %p162_p1 = scmp.ne.s32.totalorder %s620_s22, %s616_s21 }
   0x9   : > { %p163_p2 = scmp.eq.s32.totalorder %s475_s0, 1  ;;  %p168_p3 = scmp.ne.s32.totalorder %s616_s21, %s612_s20 }
   0xa   : > { %s792_s27 = smov (%p33_p0, %s31_s27), 0  ;;  %p169_p5 = scmp.eq.s32.totalorder %s476_s26, 1 }
   0xb   : > { %p708_p4 = por %p163_p2, %p162_p1  ;;  %s147_s30 = ssub.s32 %s628_s24, %s792_s27 }
   0xc   : > { %p479_p6 = scmp.ge.s32.totalorder %s632_s25, 1  ;;  %p150_p7 = scmp.eq.s32.totalorder %s147_s30, 0 }
   0xd   : > { %p715_p8 = por %p169_p5, %p168_p3  ;;  %p212_p9 = scmp.lt.s32.totalorder %s632_s25, 3 }
   0xe   : > { %s721_s7 = scalar_select %p150_p7, %s620_s22, %s152_s28  }
   0xf   : > { %p213_p10 = pnand %p479_p6, %p212_p9 }
  0x10   : > { %p245_p11 = scmp.lt.s32.totalorder (!%p213_p10), %s624_s23, 1  ;;  %s255_s19 = sld [smem:[#allocation2]] (!%p213_p10) }
  0x11   : > { %216 = sbr.rel (%p213_p10) target bundleno = 186 (0xba), region = 40  ;;  %s241_s26 = sand.u32 (!%p213_p10), 1, %s616_s21  }
  0x12   : > { %s480_s28 = sshll.u32 (!%p213_p10), %s241_s26, 4  ;;  %s491_s30 = sshll.u32 (!%p213_p10), %s624_s23, 4 }
  0x13   : > { %s574_s18 = scalar_lea.hbm (!%p213_p10), %s783_s5, 32 }
  0x16   : > { %v257_v0 = vld [vmem:[%s781_s3] sm:$0xff]  ;;  %v634_v1 = vmov 0   ;;  %s246_s10 = scalar_select %p245_p11, %s624_s23, 1  ;;  %vm273_vm0 = vcmask 1043456   ;;  %vm269_vm1 = vcmask 293888  }
  0x17   : > { %549 = vset.pattern.permute.xlu0 %v634_v1  ;;  %v258_v9 = vld [vmem:[%s782_s4] sm:$0xff]  ;;  %s363_s0 = ssub.f32 0.0, %s255_s19  ;;  %s381_s23 = scalar_lea.sflag [#allocation4], %s241_s26 }
  0x18   : > { %356 = vperm.xlu0 %549, %v257_v0   ;;  %s492_s11 = smul.u32 80, %s246_s10  ;;  %v256_v27 = vld [vmem:[%s780_s2] sm:$0xff]  ;;  %s394_s10 = scalar_lea.hbm %s783_s5, %s491_s30 }
  0x19   : > { %v364_v53 = vstv %s363_s0  ;;  %s398_s13 = sshll.u32 %s394_s10, 4  ;;  %s399_s13 = int_to_ptr.hbm [resolvable:$true] %s398_s13 }
  0x1a   : > { %s252_s14 = scalar_lea.vmem %s779_s1, %s492_s11  ;;  %s243_s11 = scalar_lea.vmem [#allocation3], %s480_s28 }
  0x1b   : > { %v267_v2 = vld [vmem:[%s252_s14 + $0x40] sm:$0xf]  ;;  %v268_v3 = vld [vmem:[%s252_s14 + $0x48] sm:$0xf]  ;;  %v265_v4 = vld [vmem:[%s252_s14 + $0x30] sm:$0xff]  ;;  %s396_s12 = sshll.u32 %s243_s11, 4  ;;  %s397_s12 = int_to_ptr.vmem [resolvable:$true] %s396_s12 }
  0x1c   : > { %482 = vmatpush.msk.msra.mxu0 %vm273_vm0, %v267_v2  ;;  %v328_v5 = vmul.f32 %v267_v2, %v267_v2  ;;  %484 = vmatpush.msk.msra.mxu1 %vm273_vm0, %v268_v3  ;;  %v329_v6 = vmul.f32 %v268_v3, %v268_v3  ;;  %v266_v7 = vld [vmem:[%s252_s14 + $0x38] sm:$0xff]  ;;  %v263_v8 = vld [vmem:[%s252_s14 + $0x20] sm:$0xff]  ;;  %v264_v10 = vld [vmem:[%s252_s14 + $0x28] sm:$0xff]  ;;  %v326_v23 = vmul.f32 %v265_v4, %v265_v4 }
  0x1d   : > { %v261_v11 = vld [vmem:[%s252_s14 + $0x10] sm:$0xff]  ;;  %v262_v12 = vld [vmem:[%s252_s14 + $0x18] sm:$0xff]  ;;  %v259_v17 = vld [vmem:[%s252_s14] sm:$0xff]  ;;  %v324_v19 = vmul.f32 %v263_v8, %v263_v8  ;;  %v325_v20 = vmul.f32 %v264_v10, %v264_v10  ;;  %v327_v24 = vmul.f32 %v266_v7, %v266_v7 }
  0x1e   : > { %v333_v13 = vsel %vm273_vm0, %v328_v5, 0.0  ;;  %v344_v14 = vsel %vm273_vm0, %v329_v6, 0.0  ;;  %292 = vmatpush.msra.mxu0 %v265_v4  ;;  %312 = vmatpush.msra.mxu1 %v266_v7  ;;  %v322_v15 = vmul.f32 %v261_v11, %v261_v11  ;;  %v323_v16 = vmul.f32 %v262_v12, %v262_v12  ;;  %v260_v18 = vld [vmem:[%s252_s14 + $0x8] sm:$0xff]  ;;  %s568_s14 = sshra.s32 %s399_s13, 4  ;;  %s569_s14 = int_to_ptr.hbm [resolvable:$true] %s568_s14 }
  0x1f   : > { %v320_v21 = vmul.f32 %v259_v17, %v259_v17  ;;  %v321_v22 = vmul.f32 %v260_v18, %v260_v18  ;;  %s570_s15 = scalar_lea.hbm %s569_s14, 16  ;;  %p575_p1 = scmp.lt.s32.totalorder %s569_s14, %s783_s5 }
  0x20   : > { %373 = vperm.xlu0 %549, %v258_v9   ;;  %293 = vmatpush.msra.mxu0 %v263_v8  ;;  %p571_p12 = scmp.ne.s32.totalorder %s569_s14, %s570_s15  ;;  %p576_p2 = scmp.lt.s32.totalorder %s574_s18, %s570_s15 }
  0x21   : > { %313 = vmatpush.msra.mxu1 %v264_v10  ;;  %v330_v25 = vadd.f32 %v322_v15, %v320_v21  ;;  %v341_v26 = vadd.f32 %v323_v16, %v321_v22 }
  0x22   : > { %294 = vmatpush.msra.mxu0 %v261_v11  ;;  %p572_p13 = pnand %p571_p12, %p708_p4  ;;  %p577_p3 = por %p576_p2, %p575_p1 }
  0x23   : > { %314 = vmatpush.msra.mxu1 %v262_v12  ;;  %v331_v28 = vadd.f32 %v330_v25, %v324_v19  ;;  %v342_v29 = vadd.f32 %v341_v26, %v325_v20 }
  0x24   : > { %295 = vmatpush.msra.mxu0 %v259_v17  ;;  %p573_p0 = pneg %p572_p13 }
  0x25   : > { %315 = vmatpush.msra.mxu1 %v260_v18  ;;  %v332_v30 = vadd.f32 %v331_v28, %v326_v23  ;;  %v343_v31 = vadd.f32 %v342_v29, %v327_v24  ;;  %483 = vmatmul.msk.f32.vlgmr.msra.gmra.mxu0 %vm269_vm1, %v256_v27 }
  0x26   : > { %485 = vmatmul.msk.f32.vlgmr.msra.gmra.mxu1 %vm269_vm1, %v256_v27  ;;  %p578_p5 = pnand %p577_p3, %p573_p0 }
  0x27   : > { %v334_v32 = vadd.f32 %v333_v13, %v332_v30  ;;  %v345_v33 = vadd.f32 %v344_v14, %v343_v31 }
  0x29   : > { %v335_v34 = vrot.slane %v334_v32, 4  ;;  %v346_v35 = vrot.slane %v345_v33, 4 }
  0x2b   : > { %v336_v36 = vadd.f32 %v335_v34, %v334_v32  ;;  %v347_v37 = vadd.f32 %v346_v35, %v345_v33 }
  0x2d   : > { %v337_v38 = vrot.slane %v336_v36, 2  ;;  %v348_v39 = vrot.slane %v347_v37, 2 }
  0x2f   : > { %v338_v40 = vadd.f32 %v337_v38, %v336_v36  ;;  %v349_v41 = vadd.f32 %v348_v39, %v347_v37 }
  0x31   : > { %v339_v42 = vrot.slane %v338_v40, 1  ;;  %v350_v43 = vrot.slane %v349_v41, 1 }
  0x33   : > { %v340_v44 = vadd.f32 %v339_v42, %v338_v40  ;;  %v351_v45 = vadd.f32 %v350_v43, %v349_v41 }
  0x8a   : > { %v357_v50 = vpop.permute.xlu0 %356 }
  0x92   : > { %v374_v61 = vpop.permute.xlu0 %373 }
  0xa2   : > { %v297_v46 = vpop.f32.mrf.mxu0 }
  0xa3   : > { %v317_v47 = vpop.f32.mrf.mxu1  ;;  %v352_v48 = vadd.f32 %v340_v44, %v297_v46 }
  0xa4   : > { %v353_v49 = vadd.f32 %v351_v45, %v317_v47 }
  0xa5   : > { %v359_v51 = vadd.f32 %v357_v50, %v352_v48 }
  0xa6   : > { %v360_v52 = vadd.f32 %v357_v50, %v353_v49 }
  0xa7   : > { %v361_v54 = vmax.f32 %v359_v51, 0.0 }
  0xa8   : > { %v362_v55 = vmax.f32 %v360_v52, 0.0 }
  0xa9   : > { %v365_v56 = vmul.f32 %v364_v53, %v361_v54 }
  0xaa   : > { %v366_v57 = vmul.f32 %v364_v53, %v362_v55 }
  0xab   : > { %v367_v58 = vmul.f32 1.442695, %v365_v56 }
  0xac   : > { %v369_v59 = vmul.f32 1.442695, %v366_v57 }
  0xad   : > { %550 = vpow2.f32 %v367_v58 }
  0xae   : > { %552 = vpow2.f32 %v369_v59 }
  0xb3   : > { %v551_v60 = vpop.eup %550 }
  0xb4   : > { %v553_v62 = vpop.eup %552  ;;  %v376_v63 = vadd.f32 %v551_v60, %v374_v61 }
  0xb5   : > { %v377_v0 = vadd.f32 %v553_v62, %v374_v61 }
  0xb6   : > { %378 = vst [vmem:[%s243_s11] sm:$0xff] %v376_v63 }
  0xb7   : > { %379 = vst [vmem:[%s243_s11 + $0x8] sm:$0xff] %v377_v0 }
  0xb8   : > { %581 = shalt.err (!%p578_p5)
}
  0xb9   : > { %493 = dma.vmem_to_hbm [thread:$0]  (%p708_p4), %s397_s12, 256, %s399_s13, %s381_s23  }
  0xba PF: > { %p499_p6 = scmp.ge.s32.totalorder %s632_s25, 2  ;;  %s410_s26 = sand.u32 1, %s612_s20  }
  0xbb   : > { %s411_s28 = scalar_lea.sflag [#allocation4], %s410_s26 }
  0xbc   : > { %p496_p7 = pnand %p499_p6, %p715_p8 }
  0xbe   : > { %p497_p9 = pneg %p496_p7 }
  0xc0   : > { %607 = dma.done.wait (%p497_p9), %s411_s28, 256  }
  0xc1   : > { %609 = vsyncadd (%p497_p9), %s411_s28, 4294967040  ;;  %s19_s25 = sadd.s32 1, %s632_s25   ;;  %s786_s20 = smov %s616_s21 }
  0xc2   : > { %p16_p10 = scmp.ge.s32.totalorder %s19_s25, 4   ;;  %s787_s21 = smov %s620_s22 }
  0xc3   : > { %s788_s22 = smov %s721_s7  ;;  %s789_s23 = smov %s628_s24 }
  0xc4   : > { %s790_s24 = smov %s792_s27  ;;  %18 = sbr.rel (!%p16_p10) target bundleno = 6 (0x6), region = 75 }
  0xc9   :  { %417 = vsyncpa [#allocation4], 1 }
  0xca   :  { %419 = vsyncpa [#allocation4 + $0x1], 1 }

</bundles_post_ra>
